<compile_context>
chip_gen: v7x
topology: tpu7x:2x2x1
jax: 0.10.0
libtpu: 0.0.40
codegen_flags: <defaults>
</compile_context>

<pallas_src>
import math

import jax
import jax.numpy as jnp
from jax.experimental import pallas as pl
from jax.experimental.pallas import tpu as pltpu

WINDOW = 5
PAD = (WINDOW - 1) // 2
LARGE = 500.0  # module's large_number_for_sigmoid; alpha == 1 is folded in


def _make_kernel(h, w):
    """Kernel over flattened images: block is (nb, Lp), Lp = lane-padded H*W."""

    def kernel(c_ref, col_ref, row_ref, x_ref, out_ref):
        # c_ref   : (1, 1)  SMEM scalar = 500 * max(bias, 0)
        # col_ref : (1, Lp) int32, col index (p mod W) of each flattened pixel
        # row_ref : (1, Lp) int32, row index (p div W) of each flattened pixel
        # x_ref   : (nb, Lp) f32 input block;  out_ref: same shape
        c = c_ref[0, 0]
        x = x_ref[...]
        lanes = x.shape[1]
        sq = x * x

        # Hoisted, single broadcast across the batch sublanes (not per tap).
        col = jnp.broadcast_to(col_ref[...], x.shape)
        row = jnp.broadcast_to(row_ref[...], x.shape)

        def shifted(val, delta):
            # Value at flattened position p + delta (cyclic; wraps are masked out
            # by the index masks below, so they never contribute).
            if delta == 0:
                return val
            return pltpu.roll(val, (-delta) % lanes, axis=1)

        def five_tap(val, idx, extent, step):
            # sum_{d=-2..2} val[p + d*step], zeroing taps whose `idx + d` leaves
            # [0, extent) -- exactly the conv's zero padding.  Left-to-right
            # accumulation order matches `_reference` bit-for-bit.
            acc = None
            for d in range(-PAD, PAD + 1):
                term = shifted(val, d * step)
                if d > 0:
                    term = jnp.where(idx < extent - d, term, 0.0)
                elif d < 0:
                    term = jnp.where(idx >= -d, term, 0.0)
                acc = term if acc is None else acc + term
            return acc

        rows_sum = five_tap(sq, col, w, 1)    # 5-tap box sum along W (lane rolls)
        box = five_tap(rows_sum, row, h, w)   # 5-tap box sum along H (rolls by W)

        # sigmoid(z) == 0.5 * (tanh(0.5*z) + 1): one EUP op instead of exp+divide.
        z = LARGE * box - c
        out_ref[...] = (0.5 * (jnp.tanh(0.5 * z) + 1.0) * x).astype(out_ref.dtype)

    return kernel


def _padded_f32_bytes(shape):
    """f32 bytes of `shape` after TPU (sublane=8, lane=128) layout padding."""
    *lead, s, l = shape
    return 4 * math.prod(lead) * (-(-s // 8) * 8) * (-(-l // 128) * 128)


def _pick_batch_block(n, lanes, target_bytes=3 << 20):
    """Pick images-per-grid-step.

    Valid sizes keep the BlockSpec's second-to-minor dim either a multiple of 8
    (full sublane tiles) or the full batch extent.  Among sizes whose padded
    block fits `target_bytes` (~roofline plateau), prefer one leaving >= 2 grid
    steps so a v7x megacore can split the "parallel" axis; on 1-TC chips the
    extra step costs only ~0.35 us.
    """
    cands = [d for d in range(1, n + 1) if n % d == 0 and (d % 8 == 0 or d == n)]
    fits = [d for d in cands if _padded_f32_bytes((d, lanes)) <= target_bytes]
    if not fits:
        # TODO(synk): very large images with tiny batches need flat-axis tiling
        # with a 2-row halo (or a (nb, H, W) sublane-roll variant) to bound VMEM.
        return min(cands)
    half = [d for d in fits if d <= n // 2]
    return max(half) if half else max(fits)


def denoising_single_orient_forward(x_nchw, bias):
    """x_nchw: (N, 1, H, W) float32; bias: scalar.  (eval_mode is unused.)"""
    n, ch, h, w = x_nchw.shape
    assert ch == 1
    hw = h * w
    lp = -(-hw // 128) * 128            # lane-dense flattened width
    x2 = x_nchw.reshape(n, hw).astype(jnp.float32)   # metadata-only reshape
    if lp != hw:
        # Rarely taken (only if H*W % 128 != 0); pad lanes with zeros, crop after.
        x2 = jnp.pad(x2, ((0, 0), (0, lp - hw)))

    # Per-lane (col, row) indices of each flattened pixel (computed once, tiny).
    flat = jnp.arange(lp, dtype=jnp.int32)
    col = (flat % w).reshape(1, lp)
    row = (flat // w).reshape(1, lp)

    # Scalar glue hoisted out of the kernel: PyTorch zeroes a negative bias and
    # alpha == 1, so the per-element math reduces to sigmoid(500*box_sum - c).
    c = (LARGE * jnp.maximum(jnp.asarray(bias, jnp.float32), 0.0)).reshape(1, 1)

    nb = _pick_batch_block(n, lp)
    grid = (n // nb,)

    # VMEM: 2x double-buffered input + output blocks, ~7 block-sized in-kernel
    # temporaries (x, sq, roll temp, running sums, broadcast col/row, mask), and
    # the two small index blocks.  Capped at 48 MiB for v7x's 64 MiB/TC budget.
    blk = _padded_f32_bytes((nb, lp))
    idx_bytes = 2 * 2 * _padded_f32_bytes((1, lp))
    needed = 4 * blk + 7 * blk + idx_bytes + (1 << 20)
    vmem_limit = int(min(48 << 20, max(24 << 20, needed)))

    out2 = pl.pallas_call(
        _make_kernel(h, w),
        out_shape=jax.ShapeDtypeStruct((n, lp), jnp.float32),
        grid=grid,
        in_specs=[
            pl.BlockSpec(memory_space=pltpu.MemorySpace.SMEM),   # c (1,1) scalar
            pl.BlockSpec((1, lp), lambda i: (0, 0)),             # col indices
            pl.BlockSpec((1, lp), lambda i: (0, 0)),             # row indices
            pl.BlockSpec((nb, lp), lambda i: (i, 0)),            # x block
        ],
        out_specs=pl.BlockSpec((nb, lp), lambda i: (i, 0)),
        compiler_params=pltpu.CompilerParams(
            dimension_semantics=("parallel",),
            vmem_limit_bytes=vmem_limit,
        ),
    )(c, col, row, x2)

    if lp != hw:
        out2 = out2[:, :hw]
    return out2.reshape(n, 1, h, w)


def _reference(x_nchw, bias):
    # Pure-JAX reference mirroring the kernel's separable accumulation order
    # (the 500x sigmoid is steep, so matching f32 ordering keeps validation tight).
    n, _, h, w = x_nchw.shape
    x = x_nchw.reshape(n, h, w).astype(jnp.float32)
    c = LARGE * jnp.maximum(jnp.asarray(bias, jnp.float32), 0.0)
    sqp = jnp.pad(x * x, ((0, 0), (PAD, PAD), (PAD, PAD)))
    rows = sqp[:, :, 0:w]
    for dj in range(1, WINDOW):
        rows = rows + sqp[:, :, dj:dj + w]
    acc = rows[:, 0:h, :]
    for di in range(1, WINDOW):
        acc = acc + rows[:, di:di + h, :]
    out = jax.nn.sigmoid(LARGE * acc - c) * x
    return out.reshape(n, 1, h, w)


if __name__ == "__main__":
    key = jax.random.PRNGKey(0)
    kx, kb = jax.random.split(key)
    # Module's forward implies a single-channel NCHW input.
    x = jax.random.normal(kx, (2, 1, 16, 16), dtype=jnp.float32)
    # Deterministic stand-in for nn.Parameter(np.random.randn()).
    bias = jax.random.normal(kb, (), dtype=jnp.float32)
    # eval_mode argument is unused in the PyTorch forward; omitted here.

    out = denoising_single_orient_forward(x, bias)
    out = jax.block_until_ready(out)

    ref = _reference(x, bias)
    assert out.shape == (2, 1, 16, 16)
    assert jnp.allclose(out, ref, atol=1e-5, rtol=1e-5), "mismatch vs reference"
    print("KERNEL_OK")
</pallas_src>

<mosaic_0001>
module attributes {stable_mosaic.version = 11 : i64} {
  func.func @kernel(%arg0: i32, %arg1: memref<1x1xf32, #tpu.memory_space<smem>>, %arg2: memref<1x256xi32, #tpu.memory_space<vmem>>, %arg3: memref<1x256xi32, #tpu.memory_space<vmem>>, %arg4: memref<2x256xf32, #tpu.memory_space<vmem>>, %arg5: memref<2x256xf32, #tpu.memory_space<vmem>>) attributes {dimension_semantics = [#tpu.dimension_semantics<parallel>], iteration_bounds = array<i64: 1>, scalar_prefetch = 0 : i64, scratch_operands = 0 : i64, tpu.core_type = #tpu.core_type<tc>, window_params = [{transform_indices = @transform_0, window_bounds = array<i64: 1, 1>}, {pipeline_mode = #tpu.pipeline_mode<synchronous>, transform_indices = @transform_1, window_bounds = array<i64: 1, 256>}, {pipeline_mode = #tpu.pipeline_mode<synchronous>, transform_indices = @transform_2, window_bounds = array<i64: 1, 256>}, {transform_indices = @transform_3, window_bounds = array<i64: 2, 256>}, {transform_indices = @transform_4, window_bounds = array<i64: 2, 256>}]} {
    %c0 = arith.constant 0 : index
    %c0_0 = arith.constant 0 : index
    %0 = memref.load %arg1[%c0, %c0_0] : memref<1x1xf32, #tpu.memory_space<smem>>
    %c0_1 = arith.constant 0 : index
    %c0_2 = arith.constant 0 : index
    %1 = vector.load %arg4[%c0_1, %c0_2] : memref<2x256xf32, #tpu.memory_space<vmem>>, vector<2x256xf32>
    %2 = arith.mulf %1, %1 : vector<2x256xf32>
    %c0_3 = arith.constant 0 : index
    %c0_4 = arith.constant 0 : index
    %3 = vector.load %arg2[%c0_3, %c0_4] : memref<1x256xi32, #tpu.memory_space<vmem>>, vector<1x256xi32>
    %4 = vector.shape_cast %3 : vector<1x256xi32> to vector<1x256xi32>
    %5 = vector.broadcast %4 : vector<1x256xi32> to vector<2x256xi32>
    %c0_5 = arith.constant 0 : index
    %c0_6 = arith.constant 0 : index
    %6 = vector.load %arg3[%c0_5, %c0_6] : memref<1x256xi32, #tpu.memory_space<vmem>>, vector<1x256xi32>
    %7 = vector.shape_cast %6 : vector<1x256xi32> to vector<1x256xi32>
    %8 = vector.broadcast %7 : vector<1x256xi32> to vector<2x256xi32>
    %c2_i32 = arith.constant 2 : i32
    %9 = tpu.dynamic_rotate %2 by %c2_i32 dim 1 : vector<2x256xf32>, i32 -> vector<2x256xf32>
    %c2_i32_7 = arith.constant 2 : i32
    %10 = vector.broadcast %c2_i32_7 : i32 to vector<2x256xi32>
    %11 = arith.cmpi sge, %5, %10 : vector<2x256xi32>
    %cst = arith.constant 0.000000e+00 : f32
    %12 = vector.broadcast %cst : f32 to vector<2x256xf32>
    %13 = arith.select %11, %9, %12 : vector<2x256xi1>, vector<2x256xf32>
    %c1_i32 = arith.constant 1 : i32
    %14 = tpu.dynamic_rotate %2 by %c1_i32 dim 1 : vector<2x256xf32>, i32 -> vector<2x256xf32>
    %c1_i32_8 = arith.constant 1 : i32
    %15 = vector.broadcast %c1_i32_8 : i32 to vector<2x256xi32>
    %16 = arith.cmpi sge, %5, %15 : vector<2x256xi32>
    %cst_9 = arith.constant 0.000000e+00 : f32
    %17 = vector.broadcast %cst_9 : f32 to vector<2x256xf32>
    %18 = arith.select %16, %14, %17 : vector<2x256xi1>, vector<2x256xf32>
    %19 = arith.addf %13, %18 : vector<2x256xf32>
    %20 = arith.addf %19, %2 : vector<2x256xf32>
    %c255_i32 = arith.constant 255 : i32
    %21 = tpu.dynamic_rotate %2 by %c255_i32 dim 1 : vector<2x256xf32>, i32 -> vector<2x256xf32>
    %c15_i32 = arith.constant 15 : i32
    %22 = vector.broadcast %c15_i32 : i32 to vector<2x256xi32>
    %23 = arith.cmpi slt, %5, %22 : vector<2x256xi32>
    %cst_10 = arith.constant 0.000000e+00 : f32
    %24 = vector.broadcast %cst_10 : f32 to vector<2x256xf32>
    %25 = arith.select %23, %21, %24 : vector<2x256xi1>, vector<2x256xf32>
    %26 = arith.addf %20, %25 : vector<2x256xf32>
    %c254_i32 = arith.constant 254 : i32
    %27 = tpu.dynamic_rotate %2 by %c254_i32 dim 1 : vector<2x256xf32>, i32 -> vector<2x256xf32>
    %c14_i32 = arith.constant 14 : i32
    %28 = vector.broadcast %c14_i32 : i32 to vector<2x256xi32>
    %29 = arith.cmpi slt, %5, %28 : vector<2x256xi32>
    %cst_11 = arith.constant 0.000000e+00 : f32
    %30 = vector.broadcast %cst_11 : f32 to vector<2x256xf32>
    %31 = arith.select %29, %27, %30 : vector<2x256xi1>, vector<2x256xf32>
    %32 = arith.addf %26, %31 : vector<2x256xf32>
    %c32_i32 = arith.constant 32 : i32
    %33 = tpu.dynamic_rotate %32 by %c32_i32 dim 1 : vector<2x256xf32>, i32 -> vector<2x256xf32>
    %c2_i32_12 = arith.constant 2 : i32
    %34 = vector.broadcast %c2_i32_12 : i32 to vector<2x256xi32>
    %35 = arith.cmpi sge, %8, %34 : vector<2x256xi32>
    %cst_13 = arith.constant 0.000000e+00 : f32
    %36 = vector.broadcast %cst_13 : f32 to vector<2x256xf32>
    %37 = arith.select %35, %33, %36 : vector<2x256xi1>, vector<2x256xf32>
    %c16_i32 = arith.constant 16 : i32
    %38 = tpu.dynamic_rotate %32 by %c16_i32 dim 1 : vector<2x256xf32>, i32 -> vector<2x256xf32>
    %c1_i32_14 = arith.constant 1 : i32
    %39 = vector.broadcast %c1_i32_14 : i32 to vector<2x256xi32>
    %40 = arith.cmpi sge, %8, %39 : vector<2x256xi32>
    %cst_15 = arith.constant 0.000000e+00 : f32
    %41 = vector.broadcast %cst_15 : f32 to vector<2x256xf32>
    %42 = arith.select %40, %38, %41 : vector<2x256xi1>, vector<2x256xf32>
    %43 = arith.addf %37, %42 : vector<2x256xf32>
    %44 = arith.addf %43, %32 : vector<2x256xf32>
    %c240_i32 = arith.constant 240 : i32
    %45 = tpu.dynamic_rotate %32 by %c240_i32 dim 1 : vector<2x256xf32>, i32 -> vector<2x256xf32>
    %c15_i32_16 = arith.constant 15 : i32
    %46 = vector.broadcast %c15_i32_16 : i32 to vector<2x256xi32>
    %47 = arith.cmpi slt, %8, %46 : vector<2x256xi32>
    %cst_17 = arith.constant 0.000000e+00 : f32
    %48 = vector.broadcast %cst_17 : f32 to vector<2x256xf32>
    %49 = arith.select %47, %45, %48 : vector<2x256xi1>, vector<2x256xf32>
    %50 = arith.addf %44, %49 : vector<2x256xf32>
    %c224_i32 = arith.constant 224 : i32
    %51 = tpu.dynamic_rotate %32 by %c224_i32 dim 1 : vector<2x256xf32>, i32 -> vector<2x256xf32>
    %c14_i32_18 = arith.constant 14 : i32
    %52 = vector.broadcast %c14_i32_18 : i32 to vector<2x256xi32>
    %53 = arith.cmpi slt, %8, %52 : vector<2x256xi32>
    %cst_19 = arith.constant 0.000000e+00 : f32
    %54 = vector.broadcast %cst_19 : f32 to vector<2x256xf32>
    %55 = arith.select %53, %51, %54 : vector<2x256xi1>, vector<2x256xf32>
    %56 = arith.addf %50, %55 : vector<2x256xf32>
    %cst_20 = arith.constant 5.000000e+02 : f32
    %57 = vector.broadcast %cst_20 : f32 to vector<2x256xf32>
    %58 = arith.mulf %57, %56 : vector<2x256xf32>
    %59 = vector.broadcast %0 : f32 to vector<2x256xf32>
    %60 = arith.subf %58, %59 : vector<2x256xf32>
    %cst_21 = arith.constant 5.000000e-01 : f32
    %61 = vector.broadcast %cst_21 : f32 to vector<2x256xf32>
    %62 = arith.mulf %61, %60 : vector<2x256xf32>
    %63 = math.tanh %62 : vector<2x256xf32>
    %cst_22 = arith.constant 1.000000e+00 : f32
    %64 = vector.broadcast %cst_22 : f32 to vector<2x256xf32>
    %65 = arith.addf %63, %64 : vector<2x256xf32>
    %cst_23 = arith.constant 5.000000e-01 : f32
    %66 = vector.broadcast %cst_23 : f32 to vector<2x256xf32>
    %67 = arith.mulf %66, %65 : vector<2x256xf32>
    %68 = arith.mulf %67, %1 : vector<2x256xf32>
    %c0_24 = arith.constant 0 : index
    %c0_25 = arith.constant 0 : index
    %69 = vector.load %arg5[%c0_24, %c0_25] : memref<2x256xf32, #tpu.memory_space<vmem>>, vector<2x256xf32>
    tpu.vector_store %arg5[%c0_24, %c0_25], %68 {strides = array<i32>} : memref<2x256xf32, #tpu.memory_space<vmem>>, vector<2x256xf32>,
    return
  }
  func.func @transform_0(%arg0: i32) -> (i32, i32) {
    %c0_i32 = arith.constant 0 : i32
    %c0_i32_0 = arith.constant 0 : i32
    %c0_i32_1 = arith.constant 0 : i32
    return %c0_i32, %c0_i32_0 : i32, i32
  }
  func.func @transform_1(%arg0: i32) -> (i32, i32) {
    %c0_i32 = arith.constant 0 : i32
    %c0_i32_0 = arith.constant 0 : i32
    %c0_i32_1 = arith.constant 0 : i32
    return %c0_i32, %c0_i32_0 : i32, i32
  }
  func.func @transform_2(%arg0: i32) -> (i32, i32) {
    %c0_i32 = arith.constant 0 : i32
    %c0_i32_0 = arith.constant 0 : i32
    %c0_i32_1 = arith.constant 0 : i32
    return %c0_i32, %c0_i32_0 : i32, i32
  }
  func.func @transform_3(%arg0: i32) -> (i32, i32) {
    %c0_i32 = arith.constant 0 : i32
    %c0_i32_0 = arith.constant 0 : i32
    return %arg0, %c0_i32 : i32, i32
  }
  func.func @transform_4(%arg0: i32) -> (i32, i32) {
    %c0_i32 = arith.constant 0 : i32
    %c0_i32_0 = arith.constant 0 : i32
    return %arg0, %c0_i32 : i32, i32
  }
}

</mosaic_0001>

<bundles_post_ra>
// kernel: tpu_custom_call.1
= control target key start
LH: loop header
LB: loop body
LE: loop exit
PB: predicated region body
PF: predicated region fallthrough
CT: control target
= control target key end

     0   :  { %10 = vsyncpa [#allocation4], 0  ;;  %s391_s0 = inlined_call_operand.<no memory space> [shape: f32[1,1], index: 0, kind: input, shape index: {}]   ;;  %s392_s1 = inlined_call_operand.vmem [shape: s32[1,256], index: 1, kind: input, shape index: {}]   ;;  %s393_s2 = inlined_call_operand.hbm [shape: s32[1,256], index: 2, kind: input, shape index: {}]   ;;  %s394_s3 = inlined_call_operand.vmem [shape: f32[2,256], index: 3, kind: input, shape index: {}]   ;;  %s395_s4 = inlined_call_operand.hbm [shape: f32[2,256], index: 4, kind: output, shape index: {}]  }
   0x1   :  { %11 = vsyncpa [#allocation5], 0  ;;  %s286_s15 = smov [#allocation3]   ;;  %s238_s19 = scalar_lea.hbm %s393_s2, 32 }
   0x2   :  { %s22_s16 = sshll.u32 %s286_s15, 4  ;;  %p239_p0 = scmp.ne.s32.totalorder %s393_s2, %s238_s19  ;;  %s23_s16 = int_to_ptr.vmem [resolvable:$true] %s22_s16 }
   0x3   :  { %p242_p1 = scmp.lt.u32.totalorder %s238_s19, %s393_s2 }
   0x5   :  { %p244_p2 = pnand %p242_p1, %p239_p0 }
   0x7   :  { %247 = shalt.err (!%p244_p2)
}
   0x8   :  { %s248_s24 = scalar_lea.vmem %s23_s16, 32  ;;  %p253_p4 = scmp.lt.s32.totalorder %s23_s16, %s23_s16 }
   0x9   :  { %p249_p3 = scmp.ne.s32.totalorder %s23_s16, %s248_s24  ;;  %p254_p5 = scmp.lt.s32.totalorder %s248_s24, %s248_s24 }
   0xb   :  { %p255_p6 = por %p254_p5, %p253_p4 }
   0xd   :  { %p256_p7 = pnand %p255_p6, %p249_p3 }
   0xf   :  { %259 = shalt.err (!%p256_p7)
}
  0x10   :  { %25 = dma.hbm_to_vmem [thread:$0]  %s393_s2, 32, %s23_s16, [#allocation4]  }
  0x11   :  { %282 = dma.done.wait [#allocation4], 32  }
  0x12   :  { %283 = vsyncadd [#allocation4], 4294967264  ;;  %v35_v0 = vlaneseq  ;;  %v287_v1 = vmov 1983009808   ;;  %v342_v6 = vld [vmem:[%s394_s3] sm:$0xf] }
  0x13   :  { %v54_v2 = vunpack.c.l.s4 %v287_v1  ;;  %v33_v7 = vmul.f32 %v342_v6, %v342_v6  ;;  %s288_s2 = smov 1   ;;  %s289_s29 = smov 2   ;;  %v34_v12 = vld [vmem:[%s392_s1] sm:$0x3] }
  0x14   :  { %v334_v3 = vshrl.u32 %v35_v0, 7  ;;  %s290_s30 = smov 127   ;;  %s291_s5 = smov 126   ;;  %v352_v13 = vand.u32 127, %v35_v0  ;;  %v43_v48 = vld [vmem:[#allocation3] sm:$0x3] }
  0x15   :  { %v55_v4 = vunpack.c.0.s8 %v54_v2  ;;  %s292_s1 = smov 32   ;;  %s293_s7 = smov 16  }
  0x16   :  { %v37_v10 = vsub.s32 0, %v334_v3  ;;  %v41_v11 = vsub.s32 1, %v334_v3  ;;  %vm80_vm0 = vcmp.lt.s32.totalorder %v352_v13, 1  ;;  %vm69_vm1 = vcmp.lt.s32.totalorder %v352_v13, 2  ;;  %s294_s8 = smov 112   ;;  %s295_s9 = smov 96  }
  0x17   :  { %v337_v5 = vsub.s32 %v55_v4, %v334_v3  ;;  %vm95_vm6 = vcmp.lt.s32.totalorder %v352_v13, 127  ;;  %vm108_vm9 = vcmp.lt.s32.totalorder %v352_v13, 126  ;;  %vm121_vm12 = vcmp.lt.s32.totalorder %v352_v13, 32 }
  0x18   :  { %v38_v14 = vrot.slane %v34_v12, %v37_v10  ;;  %v42_v15 = vrot.slane %v34_v12, %v41_v11  ;;  %v47_v49 = vrot.slane %v43_v48, %v37_v10  ;;  %v51_v50 = vrot.slane %v43_v48, %v41_v11 }
  0x19   :  { %v59_v8 = vrot.slane %v33_v7, %v337_v5  ;;  %vm132_vm15 = vcmp.lt.s32.totalorder %v352_v13, 16 }
  0x1a   :  { %vm83_vm2 = vcmp.ge.s32.totalorder %v38_v14, 1  ;;  %vm84_vm3 = vcmp.ge.s32.totalorder %v42_v15, 1  ;;  %vm72_vm4 = vcmp.ge.s32.totalorder %v38_v14, 2  ;;  %vm73_vm5 = vcmp.ge.s32.totalorder %v42_v15, 2 }
  0x1b   :  { %76 = vrot.lane.b32.xlu1 %v59_v8, %s288_s2  ;;  %63 = vrot.lane.b32.xlu0 %v59_v8, %s289_s29  ;;  %v60_v9 = vcombine.high %v59_v8, %v59_v8  ;;  %vm98_vm7 = vcmp.lt.s32.totalorder %v38_v14, 15  ;;  %vm99_vm8 = vcmp.lt.s32.totalorder %v42_v15, 15  ;;  %vm111_vm10 = vcmp.lt.s32.totalorder %v38_v14, 14 }
  0x1c   :  { %vm112_vm11 = vcmp.lt.s32.totalorder %v42_v15, 14  ;;  %vm124_vm13 = vcmp.ge.s32.totalorder %v47_v49, 2  ;;  %vm125_vm14 = vcmp.ge.s32.totalorder %v51_v50, 2 }
  0x1f   :  { %78 = vrot.lane.b32.xlu1 %v60_v9, %s288_s2  ;;  %65 = vrot.lane.b32.xlu0 %v60_v9, %s289_s29 }
  0x23   :  { %93 = vrot.lane.b32.xlu1 %v60_v9, %s290_s30  ;;  %91 = vrot.lane.b32.xlu0 %v59_v8, %s290_s30 }
  0x27   :  { %106 = vrot.lane.b32.xlu1 %v60_v9, %s291_s5  ;;  %104 = vrot.lane.b32.xlu0 %v59_v8, %s291_s5 }
  0x8d   :  { %v77_v16 = vpop.permute.xlu1 %76  ;;  %v64_v17 = vpop.permute.xlu0 %63 }
  0x91   :  { %v79_v18 = vpop.permute.xlu1 %78  ;;  %v66_v19 = vpop.permute.xlu0 %65 }
  0x92   :  { %v81_v20 = vsel %vm80_vm0, %v77_v16, %v79_v18  ;;  %v82_v21 = vsel %vm80_vm0, %v79_v18, %v77_v16  ;;  %v70_v22 = vsel %vm69_vm1, %v64_v17, %v66_v19  ;;  %v71_v23 = vsel %vm69_vm1, %v66_v19, %v64_v17 }
  0x93   :  { %v85_v24 = vsel %vm83_vm2, %v82_v21, 0.0  ;;  %v86_v25 = vsel %vm84_vm3, %v81_v20, 0.0  ;;  %v74_v26 = vsel %vm72_vm4, %v71_v23, 0.0  ;;  %v75_v27 = vsel %vm73_vm5, %v70_v22, 0.0 }
  0x94   :  { %v87_v28 = vadd.f32 %v85_v24, %v74_v26  ;;  %v88_v29 = vadd.f32 %v86_v25, %v75_v27  ;;  %vm135_vm0 = vcmp.ge.s32.totalorder %v47_v49, 1  ;;  %vm136_vm1 = vcmp.ge.s32.totalorder %v51_v50, 1 }
  0x95   :  { %v94_v30 = vpop.permute.xlu1 %93  ;;  %v92_v31 = vpop.permute.xlu0 %91  ;;  %vm147_vm2 = vcmp.lt.s32.totalorder %v352_v13, 112  ;;  %vm150_vm3 = vcmp.lt.s32.totalorder %v47_v49, 15  ;;  %vm151_vm4 = vcmp.lt.s32.totalorder %v51_v50, 15  ;;  %vm160_vm5 = vcmp.lt.s32.totalorder %v352_v13, 96 }
  0x96   :  { %v89_v32 = vadd.f32 %v87_v28, %v59_v8  ;;  %v90_v33 = vadd.f32 %v88_v29, %v60_v9  ;;  %v96_v34 = vsel %vm95_vm6, %v92_v31, %v94_v30  ;;  %v97_v35 = vsel %vm95_vm6, %v94_v30, %v92_v31 }
  0x97   :  { %v100_v36 = vsel %vm98_vm7, %v96_v34, 0.0  ;;  %v101_v37 = vsel %vm99_vm8, %v97_v35, 0.0  ;;  %vm163_vm6 = vcmp.lt.s32.totalorder %v47_v49, 14  ;;  %vm164_vm7 = vcmp.lt.s32.totalorder %v51_v50, 14 }
  0x98   :  { %v102_v40 = vadd.f32 %v100_v36, %v89_v32  ;;  %v103_v41 = vadd.f32 %v101_v37, %v90_v33  ;;  %v171_v22 = vstv %s391_s0  ;;  %v189_v28 = vrot.slane %v342_v6, %v337_v5  ;;  %s296_s0 = smov [#allocation6]  }
  0x99   :  { %v107_v38 = vpop.permute.xlu1 %106  ;;  %v105_v39 = vpop.permute.xlu0 %104  ;;  %s213_s12 = sshll.u32 %s296_s0, 4  ;;  %s214_s12 = int_to_ptr.vmem [resolvable:$true] %s213_s12 }
  0x9a   :  { %v109_v42 = vsel %vm108_vm9, %v105_v39, %v107_v38  ;;  %v110_v43 = vsel %vm108_vm9, %v107_v38, %v105_v39  ;;  %v190_v33 = vcombine.high %v189_v28, %v189_v28  ;;  %s260_s13 = scalar_lea.vmem %s214_s12, 64  ;;  %p265_p9 = scmp.lt.s32.totalorder %s214_s12, %s214_s12 }
  0x9b   :  { %v113_v44 = vsel %vm111_vm10, %v109_v42, 0.0  ;;  %v114_v45 = vsel %vm112_vm11, %v110_v43, 0.0  ;;  %p261_p8 = scmp.ne.s32.totalorder %s214_s12, %s260_s13  ;;  %p266_p10 = scmp.lt.s32.totalorder %s260_s13, %s260_s13 }
  0x9c   :  { %v115_v46 = vadd.f32 %v113_v44, %v102_v40  ;;  %v116_v47 = vadd.f32 %v114_v45, %v103_v41 }
  0x9d   :  { %p267_p11 = por %p266_p10, %p265_p9 }
  0x9e   :  { %119 = vrot.lane.b32.xlu1 %v116_v47, %s292_s1  ;;  %117 = vrot.lane.b32.xlu0 %v115_v46, %s292_s1 }
  0x9f   :  { %p268_p12 = pnand %p267_p11, %p261_p8 }
  0xa2   :  { %130 = vrot.lane.b32.xlu1 %v116_v47, %s293_s7  ;;  %128 = vrot.lane.b32.xlu0 %v115_v46, %s293_s7 }
  0xa6   :  { %145 = vrot.lane.b32.xlu1 %v116_v47, %s294_s8  ;;  %143 = vrot.lane.b32.xlu0 %v115_v46, %s294_s8 }
  0xaa   :  { %158 = vrot.lane.b32.xlu1 %v116_v47, %s295_s9  ;;  %156 = vrot.lane.b32.xlu0 %v115_v46, %s295_s9 }
 0x110   :  { %v120_v51 = vpop.permute.xlu1 %119  ;;  %v118_v52 = vpop.permute.xlu0 %117 }
 0x111   :  { %v122_v53 = vsel %vm121_vm12, %v118_v52, %v120_v51  ;;  %v123_v54 = vsel %vm121_vm12, %v120_v51, %v118_v52 }
 0x112   :  { %v126_v59 = vsel %vm124_vm13, %v123_v54, 0.0  ;;  %v127_v60 = vsel %vm125_vm14, %v122_v53, 0.0 }
 0x114   :  { %v131_v55 = vpop.permute.xlu1 %130  ;;  %v129_v56 = vpop.permute.xlu0 %128 }
 0x115   :  { %v133_v57 = vsel %vm132_vm15, %v129_v56, %v131_v55  ;;  %v134_v58 = vsel %vm132_vm15, %v131_v55, %v129_v56 }
 0x116   :  { %v137_v61 = vsel %vm135_vm0, %v134_v58, 0.0  ;;  %v138_v62 = vsel %vm136_vm1, %v133_v57, 0.0 }
 0x117   :  { %v139_v63 = vadd.f32 %v137_v61, %v126_v59  ;;  %v140_v0 = vadd.f32 %v138_v62, %v127_v60 }
 0x118   :  { %v146_v1 = vpop.permute.xlu1 %145  ;;  %v144_v2 = vpop.permute.xlu0 %143 }
 0x119   :  { %v141_v3 = vadd.f32 %v139_v63, %v115_v46  ;;  %v142_v4 = vadd.f32 %v140_v0, %v116_v47  ;;  %v148_v7 = vsel %vm147_vm2, %v144_v2, %v146_v1  ;;  %v149_v8 = vsel %vm147_vm2, %v146_v1, %v144_v2 }
 0x11a   :  { %v152_v9 = vsel %vm150_vm3, %v148_v7, 0.0  ;;  %v153_v10 = vsel %vm151_vm4, %v149_v8, 0.0 }
 0x11b   :  { %v154_v14 = vadd.f32 %v152_v9, %v141_v3  ;;  %v155_v15 = vadd.f32 %v153_v10, %v142_v4 }
 0x11c   :  { %v159_v11 = vpop.permute.xlu1 %158  ;;  %v157_v12 = vpop.permute.xlu0 %156 }
 0x11d   :  { %v161_v16 = vsel %vm160_vm5, %v157_v12, %v159_v11  ;;  %v162_v17 = vsel %vm160_vm5, %v159_v11, %v157_v12 }
 0x11e   :  { %v165_v18 = vsel %vm163_vm6, %v161_v16, 0.0  ;;  %v166_v19 = vsel %vm164_vm7, %v162_v17, 0.0 }
 0x11f   :  { %v167_v20 = vadd.f32 %v165_v18, %v154_v14  ;;  %v168_v21 = vadd.f32 %v166_v19, %v155_v15 }
 0x121   :  { %v169_v23 = vmul.f32 500.0, %v167_v20  ;;  %v170_v24 = vmul.f32 500.0, %v168_v21 }
 0x123   :  { %v172_v25 = vsub.f32 %v169_v23, %v171_v22  ;;  %v173_v13 = vsub.f32 %v170_v24, %v171_v22 }
 0x125   :  { %v174_v26 = vmul.f32 0.5, %v172_v25  ;;  %v175_v27 = vmul.f32 0.5, %v173_v13 }
 0x127   :  { %234 = vtanh.f32 %v174_v26 }
 0x128   :  { %236 = vtanh.f32 %v175_v27 }
 0x131   :  { %v235_v29 = vpop.eup %234 }
 0x132   :  { %v237_v30 = vpop.eup %236  ;;  %v178_v31 = vadd.f32 1.0, %v235_v29 }
 0x133   :  { %v179_v32 = vadd.f32 1.0, %v237_v30 }
 0x134   :  { %v180_v34 = vmul.f32 0.5, %v178_v31 }
 0x135   :  { %v181_v35 = vmul.f32 0.5, %v179_v32 }
 0x136   :  { %v193_v36 = vmul.f32 %v189_v28, %v180_v34 }
 0x137   :  { %v194_v37 = vmul.f32 %v190_v33, %v181_v35 }
 0x139   :  { %v197_v38 = vcombine.low %v193_v36, %v194_v37 }
 0x13b   :  { %222 = vst.sshfl [vmem:[#allocation6] sm:$0x33 pattern:$0x76325410] %v197_v38 }
 0x13c   :  { %271 = shalt.err (!%p268_p12)
}
 0x13d   :  { %s272_s16 = scalar_lea.hbm %s395_s4, 64 }
 0x13e   :  { %p273_p13 = scmp.ne.s32.totalorder %s395_s4, %s272_s16  ;;  %p276_p0 = scmp.lt.u32.totalorder %s272_s16, %s395_s4 }
 0x140   :  { %p278_p1 = pnand %p276_p0, %p273_p13 }
 0x142   :  { %281 = shalt.err (!%p278_p1)
}
 0x143   :  { %216 = dma.vmem_to_hbm [thread:$0]  %s214_s12, 64, %s395_s4, [#allocation5]  }
 0x144   :  { %284 = dma.done.wait [#allocation5], 64  }
 0x145   :  { %285 = vsyncadd [#allocation5], 4294967232 }
 0x146   :  { %220 = vsyncpa [#allocation4], 1 }
 0x147   :  { %221 = vsyncpa [#allocation5], 1 }

</bundles_post_ra>
